<compile_context>
chip_gen: v6e
topology: v6e:2x2x1
jax: 0.10.0
libtpu: 0.0.40
codegen_flags: <defaults>
</compile_context>

<pallas_src>
import jax
import jax.numpy as jnp
from jax.experimental import pallas as pl
from jax.experimental.pallas import tpu as pltpu

LEAKY_SLOPE = 0.01  # torch.nn.LeakyReLU default negative_slope


def deep_autoreg_kernel(x_ref, w_ref, a_ref, wdT_ref, o_ref):
    """Per-batch-element kernel body.

    x_ref   : (1, N, F)   node features for the current batch element
    w_ref   : (F, F)      fixed GCN weight W          (VMEM-resident across grid)
    a_ref   : (N, N)      adjacency A                 (VMEM-resident across grid)
    wdT_ref : (F, F_out)  dense (no-bias) weight, pre-transposed (VMEM-resident)
    o_ref   : (1, N, F_out)
    """
    x = x_ref[0]                                                               # (N, F)

    # GCN with fixed W:  h = A @ (x @ W)
    xw = jnp.dot(x, w_ref[...], preferred_element_type=jnp.float32)           # (N, F)
    h = jnp.dot(a_ref[...], xw, preferred_element_type=jnp.float32)           # (N, F)

    # LeakyReLU (slope in (0,1) -> max is equivalent) followed by bias-free Linear
    act = jnp.maximum(h, LEAKY_SLOPE * h)
    out = jnp.dot(act, wdT_ref[...], preferred_element_type=jnp.float32)      # (N, F_out)

    o_ref[0] = out.astype(o_ref.dtype)


def deep_autoreg_forward(x, W, A, Wd):
    """x: (B, N, F) f32; W: (F, F); A: (N, N); Wd: (F_out, F) (PyTorch Linear layout)."""
    B, N, F = x.shape
    F_out = Wd.shape[0]
    WdT = Wd.T  # (F, F_out)

    # Logically executed work (per review: honest advisory hint for XLA).
    flops = B * (2 * N * F * F + 2 * N * N * F + 2 * N * F * F_out)
    bytes_accessed = 4 * (B * N * F + F * F + N * N + F * F_out + B * N * F_out)

    out = pl.pallas_call(
        deep_autoreg_kernel,
        out_shape=jax.ShapeDtypeStruct((B, N, F_out), x.dtype),
        grid_spec=pltpu.PrefetchScalarGridSpec(
            num_scalar_prefetch=0,
            grid=(B,),
            in_specs=[
                pl.BlockSpec((1, N, F), lambda b: (b, 0, 0)),    # x, per batch element
                pl.BlockSpec((F, F), lambda b: (0, 0)),          # W, constant -> resident
                pl.BlockSpec((N, N), lambda b: (0, 0)),          # A, constant -> resident
                pl.BlockSpec((F, F_out), lambda b: (0, 0)),      # Wd^T, constant -> resident
            ],
            out_specs=pl.BlockSpec((1, N, F_out), lambda b: (b, 0, 0)),
        ),
        compiler_params=pltpu.CompilerParams(dimension_semantics=("parallel",)),
        cost_estimate=pl.CostEstimate(
            flops=flops, transcendentals=0, bytes_accessed=bytes_accessed),
    )(x, W, A, WdT)

    return out


def reference_forward(x, W, A, Wd):
    xw = jnp.einsum("bnf,fg->bng", x, W)
    h = jnp.einsum("nm,bmf->bnf", A, xw)
    act = jnp.where(h > 0, h, LEAKY_SLOPE * h)
    return jnp.einsum("bnf,of->bno", act, Wd)


if __name__ == "__main__":
    # Small shapes consistent with the module: n_nodes=16, in_features=32,
    # out_features=32, n_linear_layers=1, batch=2.
    B, N, F, F_out = 2, 16, 32, 32

    key = jax.random.PRNGKey(0)
    kx, kW, kA, kD = jax.random.split(key, 4)

    x = jax.random.normal(kx, (B, N, F), dtype=jnp.float32)

    # Deterministic parameter init (shapes match the PyTorch module):
    #   A: (n_nodes, n_sources) -- trunc_normal-ish
    A = 0.02 * jax.random.truncated_normal(kA, -2.0, 2.0, (N, N), dtype=jnp.float32)
    #   W: (in_features, in_features) -- xavier_uniform-ish
    limW = (6.0 / (F + F)) ** 0.5
    W = jax.random.uniform(kW, (F, F), minval=-limW, maxval=limW, dtype=jnp.float32)
    #   dense linear_0: (out_features, in_features), no bias
    limD = (1.0 / F) ** 0.5
    Wd = jax.random.uniform(kD, (F_out, F), minval=-limD, maxval=limD, dtype=jnp.float32)

    out = deep_autoreg_forward(x, W, A, Wd)
    out = jax.block_until_ready(out)

    ref = reference_forward(x, W, A, Wd)
    assert out.shape == (B, N, F_out)
    assert jnp.allclose(out, ref, atol=1e-5, rtol=1e-5), "mismatch vs reference"

    print("KERNEL_OK")
</pallas_src>

<mosaic_0001>
module attributes {stable_mosaic.version = 11 : i64} {
  func.func @deep_autoreg_kernel(%arg0: i32, %arg1: memref<1x16x32xf32, #tpu.memory_space<vmem>>, %arg2: memref<32x32xf32, #tpu.memory_space<vmem>>, %arg3: memref<16x16xf32, #tpu.memory_space<vmem>>, %arg4: memref<32x32xf32, #tpu.memory_space<vmem>>, %arg5: memref<1x16x32xf32, #tpu.memory_space<vmem>>) attributes {dimension_semantics = [#tpu.dimension_semantics<parallel>], iteration_bounds = array<i64: 2>, scalar_prefetch = 0 : i64, scratch_operands = 0 : i64, tpu.core_type = #tpu.core_type<tc>, window_params = [{transform_indices = @transform_0, window_bounds = array<i64: 1, 16, 32>}, {pipeline_mode = #tpu.pipeline_mode<synchronous>, transform_indices = @transform_1, window_bounds = array<i64: 32, 32>}, {pipeline_mode = #tpu.pipeline_mode<synchronous>, transform_indices = @transform_2, window_bounds = array<i64: 16, 16>}, {pipeline_mode = #tpu.pipeline_mode<synchronous>, transform_indices = @transform_3, window_bounds = array<i64: 32, 32>}, {transform_indices = @transform_4, window_bounds = array<i64: 1, 16, 32>}]} {
    %c0 = arith.constant 0 : index
    %c0_0 = arith.constant 0 : index
    %c0_1 = arith.constant 0 : index
    %0 = vector.load %arg1[%c0, %c0_0, %c0_1] : memref<1x16x32xf32, #tpu.memory_space<vmem>>, vector<1x16x32xf32>
    %1 = vector.shape_cast %0 : vector<1x16x32xf32> to vector<16x32xf32>
    %c0_2 = arith.constant 0 : index
    %c0_3 = arith.constant 0 : index
    %2 = vector.load %arg2[%c0_2, %c0_3] : memref<32x32xf32, #tpu.memory_space<vmem>>, vector<32x32xf32>
    %cst = arith.constant dense<0.000000e+00> : vector<16x32xf32>
    %3 = tpu.matmul %1, %2, %cst {dimension_numbers = #tpu.dot_dimension_numbers<[1], [0], [0], [1], [0, 0, 1, 1], [], []>} : vector<16x32xf32>, vector<32x32xf32>, vector<16x32xf32> -> vector<16x32xf32>
    %c0_4 = arith.constant 0 : index
    %c0_5 = arith.constant 0 : index
    %4 = vector.load %arg3[%c0_4, %c0_5] : memref<16x16xf32, #tpu.memory_space<vmem>>, vector<16x16xf32>
    %cst_6 = arith.constant dense<0.000000e+00> : vector<16x32xf32>
    %5 = tpu.matmul %4, %3, %cst_6 {dimension_numbers = #tpu.dot_dimension_numbers<[1], [0], [0], [1], [0, 0, 1, 1], [], []>} : vector<16x16xf32>, vector<16x32xf32>, vector<16x32xf32> -> vector<16x32xf32>
    %cst_7 = arith.constant 0.00999999977 : f32
    %6 = vector.broadcast %cst_7 : f32 to vector<16x32xf32>
    %7 = arith.mulf %6, %5 : vector<16x32xf32>
    %8 = arith.maximumf %5, %7 : vector<16x32xf32>
    %c0_8 = arith.constant 0 : index
    %c0_9 = arith.constant 0 : index
    %9 = vector.load %arg4[%c0_8, %c0_9] : memref<32x32xf32, #tpu.memory_space<vmem>>, vector<32x32xf32>
    %cst_10 = arith.constant dense<0.000000e+00> : vector<16x32xf32>
    %10 = tpu.matmul %8, %9, %cst_10 {dimension_numbers = #tpu.dot_dimension_numbers<[1], [0], [0], [1], [0, 0, 1, 1], [], []>} : vector<16x32xf32>, vector<32x32xf32>, vector<16x32xf32> -> vector<16x32xf32>
    %c0_11 = arith.constant 0 : index
    %c0_12 = arith.constant 0 : index
    %c0_13 = arith.constant 0 : index
    %11 = vector.load %arg5[%c0_11, %c0_12, %c0_13] : memref<1x16x32xf32, #tpu.memory_space<vmem>>, vector<1x16x32xf32>
    %12 = vector.shape_cast %11 : vector<1x16x32xf32> to vector<16x32xf32>
    %13 = vector.shape_cast %10 : vector<16x32xf32> to vector<1x16x32xf32>
    tpu.vector_store %arg5[%c0_11, %c0_12, %c0_13], %13 {strides = array<i32>} : memref<1x16x32xf32, #tpu.memory_space<vmem>>, vector<1x16x32xf32>,
    return
  }
  func.func @transform_0(%arg0: i32) -> (i32, i32, i32) {
    %c0_i32 = arith.constant 0 : i32
    %c0_i32_0 = arith.constant 0 : i32
    %c0_i32_1 = arith.constant 0 : i32
    return %arg0, %c0_i32, %c0_i32_0 : i32, i32, i32
  }
  func.func @transform_1(%arg0: i32) -> (i32, i32) {
    %c0_i32 = arith.constant 0 : i32
    %c0_i32_0 = arith.constant 0 : i32
    %c0_i32_1 = arith.constant 0 : i32
    return %c0_i32, %c0_i32_0 : i32, i32
  }
  func.func @transform_2(%arg0: i32) -> (i32, i32) {
    %c0_i32 = arith.constant 0 : i32
    %c0_i32_0 = arith.constant 0 : i32
    %c0_i32_1 = arith.constant 0 : i32
    return %c0_i32, %c0_i32_0 : i32, i32
  }
  func.func @transform_3(%arg0: i32) -> (i32, i32) {
    %c0_i32 = arith.constant 0 : i32
    %c0_i32_0 = arith.constant 0 : i32
    %c0_i32_1 = arith.constant 0 : i32
    return %c0_i32, %c0_i32_0 : i32, i32
  }
  func.func @transform_4(%arg0: i32) -> (i32, i32, i32) {
    %c0_i32 = arith.constant 0 : i32
    %c0_i32_0 = arith.constant 0 : i32
    %c0_i32_1 = arith.constant 0 : i32
    return %arg0, %c0_i32, %c0_i32_0 : i32, i32, i32
  }
}

</mosaic_0001>

<bundles_post_ra>
// kernel: tpu_custom_call.1
= control target key start
LH: loop header
LB: loop body
LE: loop exit
PB: predicated region body
PF: predicated region fallthrough
CT: control target
= control target key end

     0   :  { %9 = vsyncpa [#allocation3], 0  ;;  %s1229_s0 = inlined_call_operand.hbm [shape: f32[2,16,32], index: 0, kind: input, shape index: {}]   ;;  %s1230_s1 = inlined_call_operand.hbm [shape: f32[32,32], index: 1, kind: input, shape index: {}]   ;;  %s1231_s2 = inlined_call_operand.hbm [shape: f32[16,16], index: 2, kind: input, shape index: {}]   ;;  %s1232_s3 = inlined_call_operand.hbm [shape: f32[32,32], index: 3, kind: input, shape index: {}]   ;;  %s1233_s4 = inlined_call_operand.hbm [shape: f32[2,16,32], index: 4, kind: output, shape index: {}]  }
   0x1   :  { %11 = vsyncpa [#allocation3 + $0x1], 0 }
   0x2   :  { %12 = vsyncpa [#allocation6], 0 }
   0x3   :  { %13 = vsyncpa [#allocation9], 0 }
   0x4   :  { %14 = vsyncpa [#allocation4], 0 }
   0x5   :  { %16 = vsyncpa [#allocation4 + $0x1], 0  ;;  %s1007_s15 = smov 0   ;;  %s1009_s16 = smov 0  }
   0x6   :  { %s1011_s17 = smov 0   ;;  %s1013_s18 = smov 0  }
   0x7 LB: > { %s1028_s19 = sadd.s32 4294967295, %s971_s18   ;;  %s639_s20 = sadd.s32 4294967294, %s971_s18   ;;  %s971_s18 = sphi %s1013_s18, %s1256_s18   ;;  %s967_s17 = sphi %s1011_s17, %s1255_s17   ;;  %s963_s16 = sphi %s1009_s16, %s1254_s16   ;;  %s959_s15 = sphi %s1007_s15, %s1253_s15  }
   0x8   : > { %p42_p0 = scmp.ne.s32.totalorder %s963_s16, %s959_s15  ;;  %p1234_p1 = scmp.eq.s32.totalorder %s1028_s19, 0 }
   0x9   : > { %p129_p2 = scmp.eq.s32.totalorder %s1028_s19, 1  ;;  %p135_p3 = scmp.eq.s32.totalorder %s639_s20, 1 }
   0xa   : > { %p1037_p4 = por %p1234_p1, %p42_p0  ;;  %p640_p5 = scmp.ge.s32.totalorder %s971_s18, 1 }
   0xb   : > { %p1042_p6 = por %p135_p3, %p42_p0  ;;  %p142_p7 = scmp.lt.s32.totalorder %s971_s18, 3 }
   0xc   : > { %s1238_s21 = scalar_select %p1037_p4, 1, 0 }
   0xd   : > { %s1239_s22 = scalar_select %p1042_p6, 1, 0 }
   0xe   : > { %p1047_p8 = pnand %p640_p5, %p142_p7  ;;  %s973_s24 = smov [#allocation5]  }
   0xf   : > { %s154_s25 = sshll.u32 %s973_s24, 4  ;;  %s974_s27 = smov [#allocation7]   ;;  %s155_s25 = int_to_ptr.vmem [resolvable:$true] %s154_s25 }
  0x10   : > { %s1240_s23 = scalar_select %p1047_p8, 1, 0 }
  0x11   : > { %p728_p9 = pneg %p1047_p8  ;;  %s167_s28 = sshll.u32 %s974_s27, 4  ;;  %s168_s28 = int_to_ptr.vmem [resolvable:$true] %s167_s28 }
  0x12   : > { %s975_s29 = smov [#allocation8]   ;;  %s804_s5 = scalar_lea.vmem %s155_s25, 512 }
  0x13   : > { %p1056_p11 = pnand %p728_p9, %p1234_p1  ;;  %s180_s30 = sshll.u32 %s975_s29, 4  ;;  %s181_s30 = int_to_ptr.vmem [resolvable:$true] %s180_s30 }
  0x14   : > { %p805_p13 = scmp.ne.s32.totalorder %s155_s25, %s804_s5  ;;  %p812_p5 = scmp.lt.s32.totalorder %s155_s25, %s155_s25 }
  0x15   : > { %p795_p12 = pneg %p1056_p11  ;;  %p813_p7 = scmp.lt.s32.totalorder %s804_s5, %s804_s5 }
  0x17   : > { %p807_p0 = pnand %p805_p13, %p795_p12  ;;  %p814_p9 = por %p813_p7, %p812_p5 }
  0x19   : > { %p808_p3 = pneg %p807_p0 }
  0x1b   : > { %p815_p10 = pnand %p814_p9, %p808_p3 }
  0x1d   : > { %818 = shalt.err (!%p815_p10)
}
  0x1e   : > { %s976_s6 = smov 128   ;;  %s977_s7 = smov 8  }
  0x1f   : > { %731 = dma.hbm_to_vmem [thread:$0]  (!%p1056_p11), %s1230_s1, 512, %s155_s25, [#allocation6], %s976_s6, %s976_s6, %s977_s7  }
  0x20   : > { %s830_s10 = scalar_lea.vmem %s168_s28, 256  ;;  %p838_p3 = scmp.lt.s32.totalorder %s168_s28, %s168_s28 }
  0x21   : > { %p831_p13 = scmp.ne.s32.totalorder %s168_s28, %s830_s10  ;;  %p839_p10 = scmp.lt.s32.totalorder %s830_s10, %s830_s10 }
  0x23   : > { %p833_p0 = pnand %p831_p13, %p795_p12  ;;  %p840_p7 = por %p839_p10, %p838_p3 }
  0x25   : > { %p834_p5 = pneg %p833_p0 }
  0x27   : > { %p841_p9 = pnand %p840_p7, %p834_p5 }
  0x29   : > { %844 = shalt.err (!%p841_p9)
}
  0x2a   : > { %734 = dma.hbm_to_vmem [thread:$0]  (!%p1056_p11), %s1231_s2, 256, %s168_s28, [#allocation6], %s976_s6, %s976_s6, %s977_s7  }
  0x2b   : > { %s856_s13 = scalar_lea.vmem %s181_s30, 512  ;;  %p864_p3 = scmp.lt.s32.totalorder %s181_s30, %s181_s30 }
  0x2c   : > { %p857_p1 = scmp.ne.s32.totalorder %s181_s30, %s856_s13  ;;  %p865_p5 = scmp.lt.s32.totalorder %s856_s13, %s856_s13 }
  0x2e   : > { %p859_p13 = pnand %p857_p1, %p795_p12  ;;  %p866_p10 = por %p865_p5, %p864_p3 }
  0x30   : > { %p860_p0 = pneg %p859_p13 }
  0x32   : > { %p867_p7 = pnand %p866_p10, %p860_p0 }
  0x34   : > { %870 = shalt.err (!%p867_p7)
}
  0x35   : > { %737 = dma.hbm_to_vmem [thread:$0]  (!%p1056_p11), %s1232_s3, 512, %s181_s30, [#allocation9], %s976_s6, %s976_s6, %s977_s7  }
  0x36   : > { %s1096_s24 = sadd.s32 1, %s971_s18   ;;  %s29_s26 = sadd.s32 1, %s967_s17 }
  0x37   : > { %s26_s25 = ssub.s32 %s971_s18, %s1096_s24  ;;  %p36_p12 = scmp.ne.s32.totalorder %s967_s17, %s963_s16 }
  0x38   : > { %p27_p1 = scmp.eq.s32.totalorder %s26_s25, 0  ;;  %p37_p9 = scmp.eq.s32.totalorder %s971_s18, 0 }
  0x39   : > { %p749_p13 = scmp.lt.s32.totalorder %s971_s18, 2  ;;  %p1110_p3 = por %p129_p2, %p36_p12 }
  0x3a   : > { %s1106_s27 = scalar_select %p27_p1, %s967_s17, %s29_s26  }
  0x3b   : > { %p38_p0 = por %p37_p9, %p36_p12  ;;  %s194_s29 = sand.u32 1, %s967_s17  }
  0x3c   : > { %s1242_s28 = scalar_select %p1110_p3, 1, 0 }
  0x3d   : > { %s665_s5 = sshll.u32 %s971_s18, 8  ;;  %s645_s30 = sshll.u32 %s194_s29, 4 }
  0x3e   : > { %s1119_s10 = scalar_lea.hbm %s1229_s0, %s665_s5  ;;  %s198_s11 = scalar_lea.vmem [#allocation2], %s645_s30 }
  0x3f   : > { %s205_s12 = sshll.u32 %s198_s11, 4  ;;  %p1121_p11 = pnand %p749_p13, %p38_p0  ;;  %s1125_s12 = int_to_ptr.vmem [resolvable:$true] %s205_s12 }
  0x40   : > { %s1127_s14 = scalar_lea.sflag [#allocation3], %s194_s29  ;;  %s871_s20 = scalar_lea.hbm %s1119_s10, 256 }
  0x41   : > { %p872_p2 = scmp.ne.s32.totalorder %s1119_s10, %s871_s20  ;;  %p873_p5 = pneg %p1121_p11 }
  0x42   : > { %s876_s5 = scalar_lea.hbm %s1229_s0, 512  ;;  %p877_p1 = scmp.lt.s32.totalorder %s1119_s10, %s1229_s0 }
  0x43   : > { %p874_p10 = pnand %p873_p5, %p872_p2  ;;  %p878_p12 = scmp.lt.s32.totalorder %s876_s5, %s871_s20 }
  0x45   : > { %p875_p7 = pneg %p874_p10  ;;  %p879_p9 = por %p878_p12, %p877_p1 }
  0x47   : > { %p880_p13 = pnand %p879_p9, %p875_p7 }
  0x49   : > { %883 = shalt.err (!%p880_p13)
}
  0x4a   : > { %s884_s29 = scalar_lea.vmem %s1125_s12, 256  ;;  %s978_s9 = smov [#allocation2]  }
  0x4b   : > { %p885_p0 = scmp.ne.s32.totalorder %s1125_s12, %s884_s29  ;;  %s889_s11 = sshll.u32 %s978_s9, 4  ;;  %s890_s11 = int_to_ptr.vmem [resolvable:$false] %s889_s11 }
  0x4c   : > { %s891_s25 = scalar_lea.vmem %s890_s11, 512  ;;  %p892_p10 = scmp.lt.s32.totalorder %s1125_s12, %s890_s11 }
  0x4d   : > { %p887_p6 = pnand %p885_p0, %p873_p5  ;;  %p893_p3 = scmp.lt.s32.totalorder %s891_s25, %s884_s29 }
  0x4f   : > { %p888_p2 = pneg %p887_p6  ;;  %p894_p4 = por %p893_p3, %p892_p10 }
  0x51   : > { %p895_p8 = pnand %p894_p4, %p888_p2 }
  0x53   : > { %898 = shalt.err (!%p895_p8)
}
  0x54   : > { %741 = dma.hbm_to_vmem [thread:$0]  (!%p1121_p11), %s1119_s10, 256, %s1125_s12, %s1127_s14, %s976_s6, %s976_s6, %s977_s7  }
  0x55   : > { %p1244_p6 = scmp.ne.s32.totalorder %s1240_s23, 0 }
  0x56   : > { %s1154_s20 = sand.u32 (!%p1244_p6), 1, %s963_s16   ;;  %p1245_p4 = scmp.ne.s32.totalorder (!%p1244_p6), %s1238_s21, 0 }
  0x57   : > { %217 = sbr.rel (%p1244_p6) target bundleno = 715 (0x2cb), region = 36  ;;  %s649_s26 = sshll.u32 (!%p1244_p6), %s1154_s20, 4 }
  0x58   : > { %s220_s5 = scalar_lea.sflag (!%p1244_p6), [#allocation3], %s1154_s20  ;;  %s223_s13 = scalar_lea.vmem (!%p1244_p6), [#allocation2], %s649_s26 }
  0x5c   : > { %942 = dma.done.wait (%p1245_p4), %s220_s5, 256  }
  0x5d   : > { %944 = vsyncadd (%p1245_p4), %s220_s5, 4294967040  ;;  %p1246_p8 = scmp.eq.s32.totalorder %s1028_s19, 0 }
  0x5f   : > { %946 = dma.done.wait (%p1246_p8), [#allocation6], 768   ;;  %p1247_p3 = pmov %p1246_p8 }
  0x61   : > { %948 = vsyncadd (%p1247_p3), [#allocation6], 4294966528  ;;  %p1248_p11 = pmov %p1247_p3 }
  0x62   : > { %p1249_p5 = pmov %p1247_p3 }
  0x63   : > { %950 = dma.done.wait (%p1248_p11), [#allocation9], 512  }
  0x64   : > { %952 = vsyncadd (%p1249_p5), [#allocation9], 4294966784  ;;  %vm266_vm0 = vcmask 261120   ;;  %v265_v0 = vld [vmem:[#allocation5 + $0x18] sm:$0xff]  ;;  %v264_v1 = vld [vmem:[#allocation5 + $0x10] sm:$0xff]  ;;  %vm350_vm1 = vcmask 130048  }
  0x65   : > { %683 = vmatprep.subr.mxu0 %v265_v0  ;;  %v260_v2 = vld [vmem:[%s223_s13] sm:$0xff]  ;;  %v263_v3 = vld [vmem:[#allocation5 + $0x8] sm:$0xff]  ;;  %v437_v12 = vld [vmem:[#allocation8 + $0x8] sm:$0xff]  ;;  %s259_s21 = scalar_lea.vmem [#allocation10], %s649_s26  ;;  %s666_s6 = sshll.u32 %s1028_s19, 8 }
  0x66   : > { %684 = vmatpush3.msra.mxu0 %v265_v0  ;;  %691 = vmatprep.mubr.msk.f32.mxu0 %vm266_vm0, %v260_v2  ;;  %v262_v4 = vld [vmem:[#allocation5] sm:$0xff]  ;;  %v261_v5 = vld [vmem:[%s223_s13 + $0x8] sm:$0xff]  ;;  %v436_v13 = vld [vmem:[#allocation8] sm:$0xff]  ;;  %s537_s23 = sshll.u32 %s259_s21, 4  ;;  %s1184_s12 = scalar_lea.hbm %s1233_s4, %s666_s6  ;;  %s1179_s23 = int_to_ptr.vmem [resolvable:$true] %s537_s23 }
  0x67   : > { %685 = vmatprep.subr.mxu0 %v264_v1  ;;  %v348_v6 = vld [vmem:[#allocation7] sm:$0xff]  ;;  %v349_v9 = vld [vmem:[#allocation7 + $0x8] sm:$0xff]  ;;  %s524_s14 = scalar_lea.sflag [#allocation4], %s1154_s20  ;;  %s899_s30 = scalar_lea.vmem %s1179_s23, 256 }
  0x68   : > { %686 = vmatpush3.msra.mxu0 %v264_v1  ;;  %698 = vmatprep.mubr.msk.f32.mxu1 %vm350_vm1, %v348_v6  ;;  %v439_v10 = vld [vmem:[#allocation8 + $0x18] sm:$0xff]  ;;  %v438_v11 = vld [vmem:[#allocation8 + $0x10] sm:$0xff]  ;;  %p900_p7 = scmp.ne.s32.totalorder %s1179_s23, %s899_s30  ;;  %p1250_p1 = scmp.ne.s32.totalorder %s1242_s28, 0 }
  0x69   : > { %687 = vmatprep.subr.mxu0 %v263_v3  ;;  %s979_s19 = smov [#allocation10]  }
  0x6a   : > { %688 = vmatpush3.msra.mxu0 %v263_v3  ;;  %p901_p12 = pnand %p900_p7, %p1250_p1  ;;  %s903_s8 = sshll.u32 %s979_s19, 4  ;;  %s904_s8 = int_to_ptr.vmem [resolvable:$false] %s903_s8 }
  0x6b   : > { %689 = vmatprep.subr.mxu0 %v262_v4  ;;  %s905_s29 = scalar_lea.vmem %s904_s8, 512  ;;  %p906_p13 = scmp.lt.s32.totalorder %s1179_s23, %s904_s8 }
  0x6c   : > { %690 = vmatpush3.msra.mxu0 %v262_v4  ;;  %p902_p9 = pneg %p901_p12  ;;  %p907_p0 = scmp.lt.s32.totalorder %s905_s29, %s899_s30 }
  0x6d   : > { %692 = vmatmul.mubr.msk.f32.vlgmr.msra.gmra.mxu0 %vm266_vm0, %v261_v5 }
  0x6e   : > { %p908_p2 = por %p907_p0, %p906_p13 }
  0x70   : > { %p909_p10 = pnand %p908_p2, %p902_p9 }
 0x12d   : > { %v693_v7 = vpop.f32.mrf.mxu0 }
 0x12e   : > { %694 = vmatprep.subr.mxu1 %v693_v7 }
 0x12f   : > { %v339_v8 = vpop.f32.mrf.mxu0  ;;  %695 = vmatpush3.msra.mxu1 %v693_v7 }
 0x130   : > { %696 = vmatprep.subr.mxu1 %v339_v8 }
 0x131   : > { %697 = vmatpush3.msra.mxu1 %v339_v8 }
 0x132   : > { %699 = vmatmul.mubr.msk.f32.vlgmr.msra.gmra.mxu1 %vm350_vm1, %v349_v9  ;;  %701 = vmatprep.subr.mxu1 %v439_v10 }
 0x133   : > { %702 = vmatpush3.msra.mxu1 %v439_v10 }
 0x134   : > { %703 = vmatprep.subr.mxu1 %v438_v11 }
 0x135   : > { %704 = vmatpush3.msra.mxu1 %v438_v11 }
 0x136   : > { %705 = vmatprep.subr.mxu1 %v437_v12 }
 0x137   : > { %706 = vmatpush3.msra.mxu1 %v437_v12 }
 0x138   : > { %707 = vmatprep.subr.mxu1 %v436_v13 }
 0x139   : > { %708 = vmatpush3.msra.mxu1 %v436_v13 }
 0x1f2   : > { %v700_v14 = vpop.f32.mrf.mxu1 }
 0x1f3   : > { %v433_v15 = vmul.f32 0.01, %v700_v14 }
 0x1f4   : > { %v423_v16 = vpop.f32.mrf.mxu1 }
 0x1f5   : > { %v432_v17 = vmul.f32 0.01, %v423_v16  ;;  %v435_v19 = vmax.f32 %v700_v14, %v433_v15 }
 0x1f7   : > { %v434_v18 = vmax.f32 %v423_v16, %v432_v17 }
 0x1f9   : > { %709 = vmatprep.mubr.msk.f32.mxu1 %vm266_vm0, %v434_v18 }
 0x1fa   : > { %710 = vmatmul.mubr.msk.f32.vlgmr.msra.gmra.mxu1 %vm266_vm0, %v435_v19 }
 0x2ba   : > { %v711_v20 = vpop.f32.mrf.mxu1 }
 0x2bb   : > { %522 = vst.msk [vmem:[%s259_s21 + $0x8] sm:$0xff] %vm266_vm0, %v711_v20 }
 0x2bc   : > { %v512_v21 = vpop.f32.mrf.mxu1 }
 0x2bd   : > { %521 = vst.msk [vmem:[%s259_s21] sm:$0xff] %vm266_vm0, %v512_v21 }
 0x2be   : > { %912 = shalt.err (!%p909_p10)
}
 0x2bf   : > { %s913_s9 = scalar_lea.hbm %s1184_s12, 256  ;;  %s917_s26 = scalar_lea.hbm %s1233_s4, 512 }
 0x2c0   : > { %p914_p6 = scmp.ne.s32.totalorder %s1184_s12, %s913_s9  ;;  %p918_p3 = scmp.lt.s32.totalorder %s1184_s12, %s1233_s4 }
 0x2c1   : > { %p919_p11 = scmp.lt.s32.totalorder %s917_s26, %s913_s9 }
 0x2c2   : > { %p915_p4 = pnand %p914_p6, %p1250_p1 }
 0x2c3   : > { %p920_p5 = por %p919_p11, %p918_p3 }
 0x2c4   : > { %p916_p8 = pneg %p915_p4 }
 0x2c6   : > { %p921_p7 = pnand %p920_p5, %p916_p8 }
 0x2c8   : > { %924 = shalt.err (!%p921_p7)
}
 0x2c9   : > { %s980_s21 = smov 128   ;;  %s981_s6 = smov 8  }
 0x2ca   : > { %726 = dma.vmem_to_hbm [thread:$0]  (%p1250_p1), %s1179_s23, 256, %s1184_s12, %s524_s14, %s980_s21, %s980_s21, %s981_s6  }
 0x2cb PF: > { %s552_s7 = sand.u32 1, %s959_s15   ;;  %p1251_p12 = scmp.ne.s32.totalorder %s1239_s22, 0 }
 0x2cc   : > { %p1252_p9 = scmp.ge.s32.totalorder %s971_s18, 2  ;;  %s553_s10 = scalar_lea.sflag [#allocation4], %s552_s7 }
 0x2ce   : > { %p743_p13 = pnand %p1252_p9, %p1251_p12 }
 0x2d0   : > { %p744_p0 = pneg %p743_p13 }
 0x2d2   : > { %954 = dma.done.wait (%p744_p0), %s553_s10, 256  }
 0x2d3   : > { %956 = vsyncadd (%p744_p0), %s553_s10, 4294967040  ;;  %p19_p2 = scmp.ge.s32.totalorder %s1096_s24, 4   ;;  %s1253_s15 = smov %s963_s16 }
 0x2d4   : > { %s1254_s16 = smov %s967_s17  ;;  %s1255_s17 = smov %s1106_s27 }
 0x2d5   : > { %s1256_s18 = smov %s1096_s24  ;;  %21 = sbr.rel (!%p19_p2) target bundleno = 7 (0x7), region = 93 }
 0x2da   :  { %558 = vsyncpa [#allocation3], 1 }
 0x2db   :  { %560 = vsyncpa [#allocation3 + $0x1], 1 }
 0x2dc   :  { %561 = vsyncpa [#allocation6], 1 }
 0x2dd   :  { %562 = vsyncpa [#allocation9], 1 }
 0x2de   :  { %563 = vsyncpa [#allocation4], 1 }
 0x2df   :  { %565 = vsyncpa [#allocation4 + $0x1], 1 }

</bundles_post_ra>
